<compile_context>
chip_gen: v7x
topology: tpu7x:2x2x1
jax: 0.10.0
libtpu: 0.0.40
codegen_flags: <defaults>
</compile_context>

<pallas_src>
import functools

import jax
import jax.numpy as jnp
from jax.experimental import pallas as pl
from jax.experimental.pallas import tpu as pltpu


def _rmsnorm_kernel(x_ref, scale_ref, o_ref, *, eps: float):
    # x_ref: (tm, dim) tile of rows; scale_ref: (1, dim) fp32, broadcast over rows.
    x = x_ref[...].astype(jnp.float32)
    ms = jnp.mean(x * x, axis=-1, keepdims=True)       # (tm, 1) mean of squares
    inv_rms = jax.lax.rsqrt(ms + eps)                   # rsqrt on EUP (free slot)
    out = x * inv_rms * scale_ref[...]                  # broadcast over rows
    o_ref[...] = out.astype(o_ref.dtype)


def _choose_row_tile(rows: int, dim: int, dtype) -> int:
    """Largest sublane-aligned row tile fitting a v7x-safe VMEM budget."""
    itemsize = jnp.dtype(dtype).itemsize
    sublane = {1: 32, 2: 16, 4: 8}.get(itemsize, 8)     # full sublane packing

    # Per-step VMEM cost model (bytes per row of tile):
    #   x tile in + out tile, each double-buffered (4 * itemsize * dim)
    #   + ~3 fp32 intermediates of (tm, dim) headroom for the compute.
    lane_dim = max(dim, 128)
    bytes_per_row = lane_dim * (4 * itemsize + 3 * 4)

    budget = 48 * 1024 * 1024                           # <= 64 MiB v7x VMEM w/ headroom
    tm = budget // bytes_per_row
    tm = max(sublane, (tm // sublane) * sublane)
    tm = min(tm, 2048)                                  # diminishing returns past this

    # Never tile beyond the (sublane-aligned) row count.
    rows_aligned = ((rows + sublane - 1) // sublane) * sublane
    tm = min(tm, rows_aligned)

    # Keep >= 2 grid steps when rows allow it, so the single grid axis can be
    # sharded across the 2 TensorCores on v7x (megacore).
    if rows_aligned > sublane and pl.cdiv(rows_aligned, tm) < 2:
        half = ((rows_aligned + 1) // 2 + sublane - 1) // sublane * sublane
        tm = max(sublane, min(tm, half))
    return tm


def rms_norm(x, weight, *, eps: float = 1e-6, add_unit_offset: bool = True):
    """Applies RMSNorm over the last axis of x with learnable `weight` (shape (dim,))."""
    orig_shape = x.shape
    dim = orig_shape[-1]
    rows = 1
    for s in orig_shape[:-1]:
        rows *= s

    x2d = x.reshape(rows, dim)

    # Hoist the (1 + weight) offset: kernel sees a ready-to-use fp32 scale row.
    w32 = weight.astype(jnp.float32)
    scale2d = ((1.0 + w32) if add_unit_offset else w32).reshape(1, dim)

    tm = _choose_row_tile(rows, dim, x.dtype)
    grid_m = pl.cdiv(rows, tm)
    rows_padded = grid_m * tm
    if rows_padded != rows:
        # cdiv grid + zero padding (padded rows -> 0 output; eps avoids NaN).
        x2d = jnp.pad(x2d, ((0, rows_padded - rows), (0, 0)))

    # TODO(synk): for dim < 128 a lane-dense fold (pack several rows into the
    # lane axis) would avoid masked vst.msk stores; skipped — tiny-dim inputs
    # are not the perf-relevant path and the fold needs an in-kernel relayout.

    kernel = functools.partial(_rmsnorm_kernel, eps=eps)

    out2d = pl.pallas_call(
        kernel,
        out_shape=jax.ShapeDtypeStruct((rows_padded, dim), x.dtype),
        grid_spec=pltpu.PrefetchScalarGridSpec(
            num_scalar_prefetch=0,
            grid=(grid_m,),
            in_specs=[
                pl.BlockSpec((tm, dim), lambda i: (i, 0)),   # row tile of x
                pl.BlockSpec((1, dim), lambda i: (0, 0)),    # full scale, reused
            ],
            out_specs=pl.BlockSpec((tm, dim), lambda i: (i, 0)),
        ),
        compiler_params=pltpu.CompilerParams(
            dimension_semantics=("parallel",),
            vmem_limit_bytes=64 * 1024 * 1024,   # above scoped defaults, <= v7x physical
        ),
    )(x2d, scale2d)

    if rows_padded != rows:
        out2d = out2d[:rows]
    return out2d.reshape(orig_shape)


def _reference_rms_norm(x, weight, eps=1e-6, add_unit_offset=True):
    xf = x.astype(jnp.float32)
    norm = xf * jax.lax.rsqrt(jnp.mean(xf * xf, axis=-1, keepdims=True) + eps)
    wf = weight.astype(jnp.float32)
    scale = (1.0 + wf) if add_unit_offset else wf
    return (norm * scale).astype(x.dtype)


if __name__ == "__main__":
    key = jax.random.PRNGKey(0)
    kx, kw, kx2, kw2 = jax.random.split(key, 4)

    # Main check: module-consistent small shape, bf16 input (exercises the
    # float32-compute / type_as(x) cast path), fp32 weight.
    batch, seq, dim = 2, 8, 32
    x = jax.random.normal(kx, (batch, seq, dim), dtype=jnp.float32).astype(jnp.bfloat16)
    weight = 0.1 * jax.random.normal(kw, (dim,), dtype=jnp.float32)

    out = rms_norm(x, weight, eps=1e-6, add_unit_offset=True)
    out = jax.block_until_ready(out)

    ref = _reference_rms_norm(x, weight, eps=1e-6, add_unit_offset=True)
    assert out.shape == x.shape and out.dtype == x.dtype
    assert jnp.allclose(out.astype(jnp.float32), ref.astype(jnp.float32),
                        atol=1e-2, rtol=1e-2)

    # Secondary check: non-divisible row count (exercises cdiv grid + padding)
    # and a lane-aligned dim.
    x2 = jax.random.normal(kx2, (3, 5, 256), dtype=jnp.float32).astype(jnp.bfloat16)
    w2 = 0.1 * jax.random.normal(kw2, (256,), dtype=jnp.float32)
    out2 = jax.block_until_ready(rms_norm(x2, w2, eps=1e-6, add_unit_offset=True))
    ref2 = _reference_rms_norm(x2, w2, eps=1e-6, add_unit_offset=True)
    assert out2.shape == x2.shape and out2.dtype == x2.dtype
    assert jnp.allclose(out2.astype(jnp.float32), ref2.astype(jnp.float32),
                        atol=1e-2, rtol=1e-2)

    print("KERNEL_OK")
</pallas_src>

<mosaic_0001>
module attributes {stable_mosaic.version = 11 : i64} {
  func.func @_rmsnorm_kernel(%arg0: i32, %arg1: memref<16x32xbf16, #tpu.memory_space<vmem>>, %arg2: memref<1x32xf32, #tpu.memory_space<vmem>>, %arg3: memref<16x32xbf16, #tpu.memory_space<vmem>>) attributes {dimension_semantics = [#tpu.dimension_semantics<parallel>], iteration_bounds = array<i64: 1>, scalar_prefetch = 0 : i64, scratch_operands = 0 : i64, tpu.core_type = #tpu.core_type<tc>, window_params = [{transform_indices = @transform_0, window_bounds = array<i64: 16, 32>}, {pipeline_mode = #tpu.pipeline_mode<synchronous>, transform_indices = @transform_1, window_bounds = array<i64: 1, 32>}, {transform_indices = @transform_2, window_bounds = array<i64: 16, 32>}]} {
    %c0 = arith.constant 0 : index
    %c0_0 = arith.constant 0 : index
    %0 = vector.load %arg1[%c0, %c0_0] : memref<16x32xbf16, #tpu.memory_space<vmem>>, vector<16x32xbf16>
    %1 = arith.extf %0 : vector<16x32xbf16> to vector<16x32xf32>
    %2 = arith.mulf %1, %1 : vector<16x32xf32>
    %cst = arith.constant dense<0.000000e+00> : vector<16xf32>
    %3 = vector.multi_reduction <add>, %2, %cst [1] : vector<16x32xf32> to vector<16xf32>
    %4 = vector.shape_cast %3 : vector<16xf32> to vector<16x1xf32>
    %cst_1 = arith.constant 3.200000e+01 : f32
    %5 = vector.broadcast %cst_1 : f32 to vector<16x1xf32>
    %6 = arith.divf %4, %5 : vector<16x1xf32>
    %cst_2 = arith.constant 9.99999997E-7 : f32
    %7 = vector.broadcast %cst_2 : f32 to vector<16x1xf32>
    %8 = arith.addf %6, %7 : vector<16x1xf32>
    %9 = math.rsqrt %8 : vector<16x1xf32>
    %10 = vector.broadcast %9 : vector<16x1xf32> to vector<16x32xf32>
    %11 = arith.mulf %1, %10 : vector<16x32xf32>
    %c0_3 = arith.constant 0 : index
    %c0_4 = arith.constant 0 : index
    %12 = vector.load %arg2[%c0_3, %c0_4] : memref<1x32xf32, #tpu.memory_space<vmem>>, vector<1x32xf32>
    %13 = vector.broadcast %12 : vector<1x32xf32> to vector<16x32xf32>
    %14 = arith.mulf %11, %13 : vector<16x32xf32>
    %15 = arith.truncf %14 : vector<16x32xf32> to vector<16x32xbf16>
    %c0_5 = arith.constant 0 : index
    %c0_6 = arith.constant 0 : index
    %16 = vector.load %arg3[%c0_5, %c0_6] : memref<16x32xbf16, #tpu.memory_space<vmem>>, vector<16x32xbf16>
    tpu.vector_store %arg3[%c0_5, %c0_6], %15 {strides = array<i32>} : memref<16x32xbf16, #tpu.memory_space<vmem>>, vector<16x32xbf16>,
    return
  }
  func.func @transform_0(%arg0: i32) -> (i32, i32) {
    %c0_i32 = arith.constant 0 : i32
    %c0_i32_0 = arith.constant 0 : i32
    return %arg0, %c0_i32 : i32, i32
  }
  func.func @transform_1(%arg0: i32) -> (i32, i32) {
    %c0_i32 = arith.constant 0 : i32
    %c0_i32_0 = arith.constant 0 : i32
    %c0_i32_1 = arith.constant 0 : i32
    return %c0_i32, %c0_i32_0 : i32, i32
  }
  func.func @transform_2(%arg0: i32) -> (i32, i32) {
    %c0_i32 = arith.constant 0 : i32
    %c0_i32_0 = arith.constant 0 : i32
    return %arg0, %c0_i32 : i32, i32
  }
}

</mosaic_0001>

<bundles_post_ra>
// kernel: tpu_custom_call.1
= control target key start
LH: loop header
LB: loop body
LE: loop exit
PB: predicated region body
PF: predicated region fallthrough
CT: control target
= control target key end

     0   :  { %7 = vsyncpa [#allocation3], 0  ;;  %s250_s0 = inlined_call_operand.hbm [shape: bf16[16,32], index: 0, kind: input, shape index: {}]   ;;  %s251_s1 = inlined_call_operand.hbm [shape: f32[1,32], index: 1, kind: input, shape index: {}]   ;;  %s252_s2 = inlined_call_operand.hbm [shape: bf16[16,32], index: 2, kind: output, shape index: {}]  }
   0x1   :  { %8 = vsyncpa [#allocation6], 0 }
   0x2   :  { %9 = vsyncpa [#allocation4], 0  ;;  %s188_s9 = smov [#allocation2]   ;;  %s116_s13 = scalar_lea.hbm %s250_s0, 128 }
   0x3   :  { %s15_s10 = sshll.u32 %s188_s9, 4  ;;  %p117_p0 = scmp.ne.s32.totalorder %s250_s0, %s116_s13  ;;  %s16_s10 = int_to_ptr.vmem [resolvable:$true] %s15_s10 }
   0x4   :  { %p120_p1 = scmp.lt.u32.totalorder %s116_s13, %s250_s0 }
   0x6   :  { %p122_p2 = pnand %p120_p1, %p117_p0 }
   0x8   :  { %125 = shalt.err (!%p122_p2)
}
   0x9   :  { %s126_s18 = scalar_lea.vmem %s16_s10, 128  ;;  %p131_p4 = scmp.lt.s32.totalorder %s16_s10, %s16_s10 }
   0xa   :  { %p127_p3 = scmp.ne.s32.totalorder %s16_s10, %s126_s18  ;;  %p132_p5 = scmp.lt.s32.totalorder %s126_s18, %s126_s18 }
   0xc   :  { %p133_p6 = por %p132_p5, %p131_p4 }
   0xe   :  { %p134_p7 = pnand %p133_p6, %p127_p3 }
  0x10   :  { %137 = shalt.err (!%p134_p7)
}
  0x11   :  { %s189_s19 = smov 64   ;;  %s190_s20 = smov 4  }
  0x12   :  { %21 = dma.hbm_to_vmem [thread:$0]  %s250_s0, 128, %s16_s10, [#allocation3], %s189_s19, %s189_s19, %s190_s20  }
  0x13   :  { %s191_s23 = smov [#allocation5]   ;;  %s138_s27 = scalar_lea.hbm %s251_s1, 16 }
  0x14   :  { %s28_s24 = sshll.u32 %s191_s23, 4  ;;  %p139_p8 = scmp.ne.s32.totalorder %s251_s1, %s138_s27  ;;  %s29_s24 = int_to_ptr.vmem [resolvable:$true] %s28_s24 }
  0x15   :  { %p142_p9 = scmp.lt.u32.totalorder %s138_s27, %s251_s1 }
  0x17   :  { %p144_p10 = pnand %p142_p9, %p139_p8 }
  0x19   :  { %147 = shalt.err (!%p144_p10)
}
  0x1a   :  { %s148_s4 = scalar_lea.vmem %s29_s24, 16  ;;  %s152_s0 = scalar_lea.vmem %s29_s24, 32 }
  0x1b   :  { %p149_p11 = scmp.ne.s32.totalorder %s29_s24, %s148_s4  ;;  %p153_p12 = scmp.lt.s32.totalorder %s29_s24, %s29_s24 }
  0x1c   :  { %p154_p13 = scmp.lt.s32.totalorder %s152_s0, %s148_s4 }
  0x1e   :  { %p155_p0 = por %p154_p13, %p153_p12 }
  0x20   :  { %p156_p1 = pnand %p155_p0, %p149_p11 }
  0x22   :  { %159 = shalt.err (!%p156_p1)
}
  0x23   :  { %31 = dma.hbm_to_vmem [thread:$0]  %s251_s1, 16, %s29_s24, [#allocation6]  }
  0x24   :  { %182 = dma.done.wait [#allocation3], 128  }
  0x25   :  { %183 = vsyncadd [#allocation3], 4294967168 }
  0x26   :  { %184 = dma.done.wait [#allocation6], 16  }
  0x27   :  { %185 = vsyncadd [#allocation6], 4294967280  ;;  %v104_v0 = vld [vmem:[#allocation2] sm:$0xff]   ;;  %vm44_vm0 = vcmask 261120   ;;  %v98_v14 = vld [vmem:[#allocation5] ss:$0 sm:$0xff] }
  0x28   :  { %v105_v1 = vunpack.c.l.bf16 %v104_v0  ;;  %v106_v2 = vunpack.c.h.bf16 %v104_v0  ;;  %vm77_vm1 = vcmask 257024   ;;  %s192_s1 = smov [#allocation7]  }
  0x29   :  { %s85_s7 = sshll.u32 %s192_s1, 4  ;;  %s86_s7 = int_to_ptr.vmem [resolvable:$true] %s85_s7 }
  0x2a   :  { %v42_v3 = vmul.f32 %v105_v1, %v105_v1  ;;  %v43_v4 = vmul.f32 %v106_v2, %v106_v2  ;;  %s160_s8 = scalar_lea.vmem %s86_s7, 128  ;;  %p165_p3 = scmp.lt.s32.totalorder %s86_s7, %s86_s7 }
  0x2b   :  { %p161_p2 = scmp.ne.s32.totalorder %s86_s7, %s160_s8  ;;  %p166_p4 = scmp.lt.s32.totalorder %s160_s8, %s160_s8 }
  0x2c   :  { %v45_v5 = vsel %vm44_vm0, %v42_v3, 0.0  ;;  %v48_v6 = vsel %vm44_vm0, %v43_v4, 0.0 }
  0x2d   :  { %46 = vadd.xlane.f32.xlu0 %v45_v5  ;;  %p167_p5 = por %p166_p4, %p165_p3 }
  0x2f   :  { %p168_p6 = pnand %p167_p5, %p161_p2 }
  0x31   :  { %49 = vadd.xlane.f32.xlu0 %v48_v6 }
  0xba   :  { %v47_v7 = vpop.xlane.xlu0 %46 }
  0xbb   :  { %v52_v8 = vmul.f32 0.03125, %v47_v7 }
  0xbd   :  { %v54_v9 = vadd.f32 1e-06, %v52_v8 }
  0xbe   :  { %v50_v10 = vpop.xlane.xlu0 %49 }
  0xbf   :  { %112 = vrsqrt.f32 %v54_v9  ;;  %v53_v11 = vmul.f32 0.03125, %v50_v10 }
  0xc1   :  { %v55_v12 = vadd.f32 1e-06, %v53_v11 }
  0xc3   :  { %114 = vrsqrt.f32 %v55_v12 }
  0xc9   :  { %v113_v13 = vpop.eup %112 }
  0xca   :  { %v58_v15 = vmul.f32 %v113_v13, %v105_v1 }
  0xcc   :  { %v67_v16 = vmul.f32 %v98_v14, %v58_v15 }
  0xcd   :  { %v115_v17 = vpop.eup %114 }
  0xce   :  { %v59_v18 = vmul.f32 %v115_v17, %v106_v2  ;;  %v101_v19 = vpack.c.bf16 %v67_v16, %v67_v16 }
  0xd0   :  { %v68_v20 = vmul.f32 %v98_v14, %v59_v18  ;;  %78 = vst.msk [vmem:[#allocation7] sm:$0xf] %vm77_vm1, %v101_v19 }
  0xd2   :  { %v102_v21 = vpack.c.bf16 %v68_v20, %v68_v20 }
  0xd4   :  { %79 = vst.msk [vmem:[#allocation7 + $0x4] sm:$0xf] %vm77_vm1, %v102_v21 }
  0xd5   :  { %171 = shalt.err (!%p168_p6)
}
  0xd6   :  { %s172_s11 = scalar_lea.hbm %s252_s2, 128 }
  0xd7   :  { %p173_p7 = scmp.ne.s32.totalorder %s252_s2, %s172_s11  ;;  %p176_p8 = scmp.lt.u32.totalorder %s172_s11, %s252_s2 }
  0xd9   :  { %p178_p9 = pnand %p176_p8, %p173_p7 }
  0xdb   :  { %181 = shalt.err (!%p178_p9)
}
  0xdc   :  { %91 = dma.vmem_to_hbm [thread:$0]  %s86_s7, 128, %s252_s2, [#allocation4], %s189_s19, %s189_s19, %s190_s20  }
  0xdd   :  { %186 = dma.done.wait [#allocation4], 128  }
  0xde   :  { %187 = vsyncadd [#allocation4], 4294967168 }
  0xdf   :  { %95 = vsyncpa [#allocation3], 1 }
  0xe0   :  { %96 = vsyncpa [#allocation6], 1 }
  0xe1   :  { %97 = vsyncpa [#allocation4], 1 }

</bundles_post_ra>
